<compile_context>
chip_gen: v6e
topology: v6e:2x2x1
jax: 0.10.0
libtpu: 0.0.40
codegen_flags: <defaults>
</compile_context>

<pallas_src>
import jax
import jax.numpy as jnp
from jax.experimental import pallas as pl
from jax.experimental.pallas import tpu as pltpu


LANE = 128                                 # lane width (last-dim tile)
MAX_TILE_BYTES_PER_BUFFER = 2 * 1024 * 1024  # per-input VMEM bytes per block


def _num_tensorcores() -> int:
    """Cores to split the grid over: 2 only on chips with 2 TCs / megacore."""
    try:
        kind = (jax.devices()[0].device_kind or "").lower()
    except Exception:
        return 1
    if ("v7" in kind) or ("v5p" in kind) or ("v4" in kind):
        return 2
    return 1   # v5e / v6e: single TensorCore -> extra axis only adds overhead


def _make_mse_kernel(tile_rows: int, steps_per_core: int, valid_rows: int,
                     needs_mask: bool):
    """Builds the accumulation kernel; static config is closed over."""

    def kernel(pred_ref, gt_ref, out_ref, acc_ref):
        c = pl.program_id(0)   # "parallel" (core) axis
        j = pl.program_id(1)   # "arbitrary" (reduction) axis

        @pl.when(j == 0)
        def _():
            acc_ref[...] = jnp.zeros_like(acc_ref)

        d = pred_ref[...].astype(jnp.float32) - gt_ref[...].astype(jnp.float32)

        if needs_mask:
            # Only the ragged last real step and fully-virtual overflow steps
            # (clamped index_map re-reads the last block) need masking.  The
            # mask must be applied BEFORE squaring: OOB rows contain garbage.
            step = c * steps_per_core + j
            ragged = (step + 1) * tile_rows > valid_rows

            @pl.when(ragged)
            def _():
                row_ids = step * tile_rows + jax.lax.broadcasted_iota(
                    jnp.int32, d.shape, 0)
                dm = jnp.where(row_ids < valid_rows, d, 0.0)
                acc_ref[...] += jnp.sum(dm * dm, axis=0, keepdims=True)

            @pl.when(jnp.logical_not(ragged))
            def _():
                acc_ref[...] += jnp.sum(d * d, axis=0, keepdims=True)
        else:
            # Hot path: no iota / compare / select at all.
            acc_ref[...] += jnp.sum(d * d, axis=0, keepdims=True)

        @pl.when(j == steps_per_core - 1)
        def _():
            # Per-lane partial sums for this core; tiny final reduce in wrapper.
            out_ref[...] = acc_ref[...]

    return kernel


def mse_loss(pred_mask: jax.Array, gt_mask: jax.Array) -> jax.Array:
    """MSE loss (mean reduction) computed with a Pallas TPU kernel."""
    assert pred_mask.shape == gt_mask.shape, "shapes must match"
    n_elems = pred_mask.size

    flat_p = pred_mask.reshape(-1)
    flat_g = gt_mask.reshape(-1)

    # Sub-lane tail (< 128 elements): handled with plain jnp on just those
    # elements instead of jnp.pad-ing full copies of both inputs.
    rem = n_elems % LANE
    n_main = n_elems - rem
    if rem:
        tp = flat_p[n_main:].astype(jnp.float32)
        tg = flat_g[n_main:].astype(jnp.float32)
        tail_sum = jnp.sum((tp - tg) ** 2)
    else:
        tail_sum = jnp.float32(0.0)

    if n_main == 0:
        # Entire input smaller than one lane row.
        return (tail_sum / jnp.float32(n_elems)).astype(jnp.float32)

    # Lane-dense (rows, 128) view of the 128-aligned prefix (free reshape for
    # the common, lane-aligned mask shapes).
    rows = n_main // LANE
    p2 = flat_p[:n_main].reshape(rows, LANE)
    g2 = flat_g[:n_main].reshape(rows, LANE)

    # Tile sizing by bytes so bf16/fp8 inputs get proportionally more rows.
    itemsize = max(jnp.dtype(pred_mask.dtype).itemsize,
                   jnp.dtype(gt_mask.dtype).itemsize)
    rows_max = max(8, MAX_TILE_BYTES_PER_BUFFER // (LANE * itemsize))
    tile_rows = rows if rows <= rows_max else rows_max
    total_steps = pl.cdiv(rows, tile_rows)

    num_cores = min(_num_tensorcores(), total_steps)
    steps_per_core = pl.cdiv(total_steps, num_cores)

    # Masking only needed if the last real step is ragged or the step count
    # does not split evenly across cores (virtual overflow steps).
    needs_mask = (rows % tile_rows != 0) or (total_steps % num_cores != 0)

    def in_index_map(c, j):
        # Clamp so no block ever starts past the array; overflow steps re-read
        # the last block and their contribution is masked to zero in-kernel.
        step = jnp.minimum(c * steps_per_core + j, total_steps - 1)
        return (step, 0)

    kernel = _make_mse_kernel(tile_rows, steps_per_core, rows, needs_mask)

    partials = pl.pallas_call(
        kernel,
        out_shape=jax.ShapeDtypeStruct((num_cores, LANE), jnp.float32),
        grid_spec=pltpu.PrefetchScalarGridSpec(
            num_scalar_prefetch=0,
            grid=(num_cores, steps_per_core),
            in_specs=[
                pl.BlockSpec((tile_rows, LANE), in_index_map),
                pl.BlockSpec((tile_rows, LANE), in_index_map),
            ],
            out_specs=pl.BlockSpec((1, LANE), lambda c, j: (c, 0)),
            scratch_shapes=[pltpu.VMEM((1, LANE), jnp.float32)],
        ),
        compiler_params=pltpu.CompilerParams(
            dimension_semantics=("parallel", "arbitrary"),
            vmem_limit_bytes=32 * 1024 * 1024,
        ),
        cost_estimate=pl.CostEstimate(
            flops=3 * n_elems,
            transcendentals=0,
            bytes_accessed=2 * n_elems * itemsize + num_cores * LANE * 4,
        ),
    )(p2, g2)

    total = jnp.sum(partials) + tail_sum
    return (total / jnp.float32(n_elems)).astype(jnp.float32)


if __name__ == "__main__":
    key = jax.random.PRNGKey(0)
    k1, k2, k3, k4 = jax.random.split(key, 4)

    # Small shapes consistent with a predicted mask: NCHW (B=2, C=1, H=16, W=16)
    pred_mask = jax.random.normal(k1, (2, 1, 16, 16), dtype=jnp.float32)
    gt_mask = (jax.random.uniform(k2, (2, 1, 16, 16)) > 0.5).astype(jnp.float32)

    loss = mse_loss(pred_mask, gt_mask)
    jax.block_until_ready(loss)
    ref = jnp.mean((pred_mask - gt_mask) ** 2)
    assert jnp.allclose(loss, ref, rtol=1e-6, atol=1e-6), (loss, ref)

    # Lane-misaligned case: exercises the plain-jnp <128-element tail path.
    p_odd = jax.random.normal(k3, (3, 1, 13, 17), dtype=jnp.float32)
    g_odd = jax.random.normal(k4, (3, 1, 13, 17), dtype=jnp.float32)
    loss2 = mse_loss(p_odd, g_odd)
    jax.block_until_ready(loss2)
    ref2 = jnp.mean((p_odd - g_odd) ** 2)
    assert jnp.allclose(loss2, ref2, rtol=1e-6, atol=1e-6), (loss2, ref2)

    print("KERNEL_OK")
</pallas_src>

<mosaic_0001>
module attributes {stable_mosaic.version = 11 : i64} {
  func.func @kernel(%arg0: i32, %arg1: i32, %arg2: memref<4x128xf32, #tpu.memory_space<vmem>>, %arg3: memref<4x128xf32, #tpu.memory_space<vmem>>, %arg4: memref<1x128xf32, #tpu.memory_space<vmem>>, %arg5: memref<1x128xf32, #tpu.memory_space<vmem>>) attributes {dimension_semantics = [#tpu.dimension_semantics<parallel>, #tpu.dimension_semantics<arbitrary>], iteration_bounds = array<i64: 1, 1>, scalar_prefetch = 0 : i64, scratch_operands = 1 : i64, tpu.core_type = #tpu.core_type<tc>, window_params = [{transform_indices = @transform_0, window_bounds = array<i64: 4, 128>}, {transform_indices = @transform_1, window_bounds = array<i64: 4, 128>}, {transform_indices = @transform_2, window_bounds = array<i64: 1, 128>}]} {
    %c0_i32 = arith.constant 0 : i32
    %0 = arith.cmpi eq, %arg1, %c0_i32 : i32
    %1 = arith.extui %0 : i1 to i32
    %c0_i32_0 = arith.constant 0 : i32
    %2 = arith.cmpi ne, %1, %c0_i32_0 : i32
    scf.if %2 {
      %cst_10 = arith.constant 0.000000e+00 : f32
      %15 = vector.broadcast %cst_10 : f32 to vector<1x128xf32>
      %c0_11 = arith.constant 0 : index
      %c0_12 = arith.constant 0 : index
      %16 = vector.load %arg5[%c0_11, %c0_12] : memref<1x128xf32, #tpu.memory_space<vmem>>, vector<1x128xf32>
      tpu.vector_store %arg5[%c0_11, %c0_12], %15 {strides = array<i32>} : memref<1x128xf32, #tpu.memory_space<vmem>>, vector<1x128xf32>,
    } else {
    }
    %c0 = arith.constant 0 : index
    %c0_1 = arith.constant 0 : index
    %3 = vector.load %arg2[%c0, %c0_1] : memref<4x128xf32, #tpu.memory_space<vmem>>, vector<4x128xf32>
    %c0_2 = arith.constant 0 : index
    %c0_3 = arith.constant 0 : index
    %4 = vector.load %arg3[%c0_2, %c0_3] : memref<4x128xf32, #tpu.memory_space<vmem>>, vector<4x128xf32>
    %5 = arith.subf %3, %4 : vector<4x128xf32>
    %c0_4 = arith.constant 0 : index
    %c0_5 = arith.constant 0 : index
    %6 = vector.load %arg5[%c0_4, %c0_5] : memref<1x128xf32, #tpu.memory_space<vmem>>, vector<1x128xf32>
    %7 = arith.mulf %5, %5 : vector<4x128xf32>
    %cst = arith.constant dense<0.000000e+00> : vector<128xf32>
    %8 = vector.multi_reduction <add>, %7, %cst [0] : vector<4x128xf32> to vector<128xf32>
    %9 = vector.shape_cast %8 : vector<128xf32> to vector<1x128xf32>
    %10 = arith.addf %6, %9 : vector<1x128xf32>
    %c0_6 = arith.constant 0 : index
    %c0_7 = arith.constant 0 : index
    %11 = vector.load %arg5[%c0_6, %c0_7] : memref<1x128xf32, #tpu.memory_space<vmem>>, vector<1x128xf32>
    tpu.vector_store %arg5[%c0_6, %c0_7], %10 {strides = array<i32>} : memref<1x128xf32, #tpu.memory_space<vmem>>, vector<1x128xf32>,
    %c0_i32_8 = arith.constant 0 : i32
    %12 = arith.cmpi eq, %arg1, %c0_i32_8 : i32
    %13 = arith.extui %12 : i1 to i32
    %c0_i32_9 = arith.constant 0 : i32
    %14 = arith.cmpi ne, %13, %c0_i32_9 : i32
    scf.if %14 {
      %c0_10 = arith.constant 0 : index
      %c0_11 = arith.constant 0 : index
      %15 = vector.load %arg5[%c0_10, %c0_11] : memref<1x128xf32, #tpu.memory_space<vmem>>, vector<1x128xf32>
      %c0_12 = arith.constant 0 : index
      %c0_13 = arith.constant 0 : index
      %16 = vector.load %arg4[%c0_12, %c0_13] : memref<1x128xf32, #tpu.memory_space<vmem>>, vector<1x128xf32>
      tpu.vector_store %arg4[%c0_12, %c0_13], %15 {strides = array<i32>} : memref<1x128xf32, #tpu.memory_space<vmem>>, vector<1x128xf32>,
    } else {
    }
    return
  }
  func.func @transform_0(%arg0: i32, %arg1: i32) -> (i32, i32) {
    %c1_i32 = arith.constant 1 : i32
    %0 = arith.muli %arg0, %c1_i32 : i32
    %1 = arith.addi %0, %arg1 : i32
    %c0_i32 = arith.constant 0 : i32
    %2 = arith.minsi %1, %c0_i32 : i32
    %c0_i32_0 = arith.constant 0 : i32
    %c0_i32_1 = arith.constant 0 : i32
    return %2, %c0_i32_0 : i32, i32
  }
  func.func @transform_1(%arg0: i32, %arg1: i32) -> (i32, i32) {
    %c1_i32 = arith.constant 1 : i32
    %0 = arith.muli %arg0, %c1_i32 : i32
    %1 = arith.addi %0, %arg1 : i32
    %c0_i32 = arith.constant 0 : i32
    %2 = arith.minsi %1, %c0_i32 : i32
    %c0_i32_0 = arith.constant 0 : i32
    %c0_i32_1 = arith.constant 0 : i32
    return %2, %c0_i32_0 : i32, i32
  }
  func.func @transform_2(%arg0: i32, %arg1: i32) -> (i32, i32) {
    %c0_i32 = arith.constant 0 : i32
    %c0_i32_0 = arith.constant 0 : i32
    return %arg0, %c0_i32 : i32, i32
  }
}

</mosaic_0001>

<bundles_post_ra>
// kernel: tpu_custom_call.1
= control target key start
LH: loop header
LB: loop body
LE: loop exit
PB: predicated region body
PF: predicated region fallthrough
CT: control target
= control target key end

     0   :  { %7 = vsyncpa [#allocation4], 0  ;;  %s195_s0 = inlined_call_operand.hbm [shape: f32[4,128], index: 0, kind: input, shape index: {}]   ;;  %s196_s1 = inlined_call_operand.hbm [shape: f32[4,128], index: 1, kind: input, shape index: {}]   ;;  %s197_s2 = inlined_call_operand.hbm [shape: f32[1,128], index: 2, kind: output, shape index: {}]  }
   0x1   :  { %8 = vsyncpa [#allocation7], 0 }
   0x2   :  { %9 = vsyncpa [#allocation5], 0  ;;  %s167_s9 = smov [#allocation3]   ;;  %s168_s11 = smov [#allocation6]  }
   0x3   :  { %s21_s10 = sshll.u32 %s167_s9, 4  ;;  %s36_s12 = sshll.u32 %s168_s11, 4  ;;  %s22_s10 = int_to_ptr.vmem [resolvable:$true] %s21_s10  ;;  %s37_s12 = int_to_ptr.vmem [resolvable:$true] %s36_s12 }
   0x4   :  { %s109_s13 = scalar_lea.vmem %s22_s10, 64  ;;  %p114_p1 = scmp.lt.s32.totalorder %s22_s10, %s22_s10 }
   0x5   :  { %p110_p0 = scmp.ne.s32.totalorder %s22_s10, %s109_s13  ;;  %p115_p2 = scmp.lt.s32.totalorder %s109_s13, %s109_s13 }
   0x7   :  { %p116_p3 = por %p115_p2, %p114_p1 }
   0x9   :  { %p117_p4 = pnand %p116_p3, %p110_p0 }
   0xb   :  { %120 = shalt.err (!%p117_p4)
}
   0xc   :  { %24 = dma.hbm_to_vmem [thread:$0]  %s195_s0, 64, %s22_s10, [#allocation4]  }
   0xd   :  { %s129_s16 = scalar_lea.vmem %s37_s12, 64  ;;  %p134_p6 = scmp.lt.s32.totalorder %s37_s12, %s37_s12 }
   0xe   :  { %p130_p5 = scmp.ne.s32.totalorder %s37_s12, %s129_s16  ;;  %p135_p7 = scmp.lt.s32.totalorder %s129_s16, %s129_s16 }
  0x10   :  { %p136_p8 = por %p135_p7, %p134_p6 }
  0x12   :  { %p137_p9 = pnand %p136_p8, %p130_p5 }
  0x14   :  { %140 = shalt.err (!%p137_p9)
}
  0x15   :  { %39 = dma.hbm_to_vmem [thread:$0]  %s196_s1, 64, %s37_s12, [#allocation7]  }
  0x16   :  { %161 = dma.done.wait [#allocation4], 64  }
  0x17   :  { %162 = vsyncadd [#allocation4], 4294967232 }
  0x18   :  { %163 = dma.done.wait [#allocation7], 64  }
  0x19   :  { %164 = vsyncadd [#allocation7], 4294967232  ;;  %v169_v0 = vmov 0.0   ;;  %v57_v1 = vld [vmem:[#allocation3] sm:$0xf]  ;;  %vm62_vm0 = vcmask 1043456  }
  0x1a   :  { %56 = vst [vmem:[#allocation2] sm:$0x1] %v169_v0  ;;  %v58_v2 = vld [vmem:[#allocation6] sm:$0xf]  ;;  %s170_s0 = smov [#allocation8]  }
  0x1b   :  { %v59_v3 = vsub.f32 %v57_v1, %v58_v2  ;;  %s83_s1 = sshll.u32 %s170_s0, 4  ;;  %s84_s1 = int_to_ptr.vmem [resolvable:$true] %s83_s1 }
  0x1c   :  { %s141_s19 = scalar_lea.vmem %s84_s1, 16  ;;  %s145_s20 = scalar_lea.vmem %s84_s1, 32 }
  0x1d   :  { %v61_v4 = vmul.f32 %v59_v3, %v59_v3  ;;  %p142_p10 = scmp.ne.s32.totalorder %s84_s1, %s141_s19  ;;  %p146_p11 = scmp.lt.s32.totalorder %s84_s1, %s84_s1 }
  0x1e   :  { %p147_p12 = scmp.lt.s32.totalorder %s145_s20, %s141_s19 }
  0x1f   :  { %v63_v5 = vsel %vm62_vm0, %v61_v4, 0.0 }
  0x20   :  { %v64_v6 = vrot.slane %v63_v5, 4  ;;  %p148_p13 = por %p147_p12, %p146_p11 }
  0x21   :  { %v60_v11 = vld [vmem:[#allocation2] sm:$0x1] }
  0x22   :  { %v65_v7 = vadd.f32 %v64_v6, %v63_v5  ;;  %p149_p0 = pnand %p148_p13, %p142_p10 }
  0x24   :  { %v66_v8 = vrot.slane %v65_v7, 2 }
  0x26   :  { %v67_v9 = vadd.f32 %v66_v8, %v65_v7 }
  0x28   :  { %v68_v10 = vrot.slane %v67_v9, 1 }
  0x2a   :  { %v69_v12 = vadd.f32 %v68_v10, %v67_v9 }
  0x2c   :  { %v70_v13 = vadd.f32 %v69_v12, %v60_v11 }
  0x2e   :  { %71 = vst [vmem:[#allocation2] sm:$0x1] %v70_v13 }
  0x35   :  { %v75_v14 = vld [vmem:[#allocation2] sm:$0x1] }
  0x36   :  { %76 = vst [vmem:[#allocation8] sm:$0x1] %v75_v14 }
  0x37   :  { %152 = shalt.err (!%p149_p0)
}
  0x38   :  { %86 = dma.vmem_to_hbm [thread:$0]  %s84_s1, 16, %s197_s2, [#allocation5]  }
  0x39   :  { %165 = dma.done.wait [#allocation5], 16  }
  0x3a   :  { %166 = vsyncadd [#allocation5], 4294967280 }
  0x3b   :  { %90 = vsyncpa [#allocation4], 1 }
  0x3c   :  { %91 = vsyncpa [#allocation7], 1 }
  0x3d   :  { %92 = vsyncpa [#allocation5], 1 }

</bundles_post_ra>
